<compile_context>
chip_gen: v7x
topology: tpu7x:2x2x1
jax: 0.10.0
libtpu: 0.0.40
codegen_flags: <defaults>
</compile_context>

<pallas_src>
import functools

import jax
import jax.numpy as jnp
from jax.experimental import pallas as pl
from jax.experimental.pallas import tpu as pltpu

_MIB = 1024 * 1024


def _round_up(a: int, b: int) -> int:
    return ((a + b - 1) // b) * b


def _pick_tile(dim: int, align: int, max_tile: int) -> int:
    """Largest tile (multiple of `align`, <= max_tile) minimizing padding waste."""
    dim_a = _round_up(dim, align)
    if dim_a <= max_tile:
        return dim_a
    best_c, best_pad = align, _round_up(dim_a, align)
    c = 2 * align
    while c <= max_tile:
        padded = _round_up(dim_a, c)
        if padded < best_pad or (padded == best_pad and c > best_c):
            best_c, best_pad = c, padded
        c += align
    return best_c


def _plan_nk(N: int, K: int, tn_max: int, tk_max: int):
    tn = _pick_tile(N, 128, tn_max)   # lane-dense output / weight minor dim
    tk = _pick_tile(K, 128, tk_max)   # lane-dense reduction dim
    return tn, tk, _round_up(N, tn), _round_up(K, tk)


def _plan_m(M: int, tm_max: int):
    tm = _pick_tile(M, 16, tm_max)    # bf16 sublane packing
    return tm, _round_up(M, tm)


def _linear_kernel(x_ref, w_ref, b_ref, o_ref):
    # x_ref: (tm, tk) bf16   w_ref: (tk, tn) bf16   b_ref: (1, tn) f32
    # o_ref: (tm, tn) f32 — K-resident (output BlockSpec ignores k), so it
    # doubles as the accumulator: init with bias at k==0, accumulate after.
    k = pl.program_id(2)

    @pl.when(k == 0)
    def _():
        o_ref[...] = jnp.broadcast_to(b_ref[...], o_ref.shape)

    o_ref[...] += jnp.dot(
        x_ref[...], w_ref[...], preferred_element_type=jnp.float32
    )


def prepare_linear_params(weight, bias, *, tn_max=1024, tk_max=1024):
    """One-time parameter prep (call at init, NOT per forward):
    pre-transpose to (K, N), cast to bf16, pad to tile-aligned shapes.

    weight: (out_features, in_features) f32 (PyTorch nn.Linear layout)
    bias:   (out_features,) f32
    returns (w_kn: (Kp, Np) bf16, b_1n: (1, Np) f32)
    """
    N, K = weight.shape
    _, _, Np, Kp = _plan_nk(N, K, tn_max, tk_max)
    w_kn = jnp.asarray(weight).T.astype(jnp.bfloat16)       # (K, N)
    if (Kp, Np) != (K, N):
        w_kn = jnp.pad(w_kn, ((0, Kp - K), (0, Np - N)))
    b_1n = jnp.asarray(bias, jnp.float32).reshape(1, N)
    if Np != N:
        b_1n = jnp.pad(b_1n, ((0, 0), (0, Np - N)))
    return w_kn, b_1n


@functools.partial(
    jax.jit,
    static_argnames=("out_features", "in_features", "tm_max", "tn_max", "tk_max"),
)
def neural_cell_forward(
    x, w_kn, b_1n, *, out_features, in_features,
    tm_max=512, tn_max=1024, tk_max=1024,
):
    """y = x @ W^T + b with pre-prepared (transposed/padded) parameters.

    x:    (batch, in_features) f32
    w_kn: (Kp, Np) bf16 from prepare_linear_params
    b_1n: (1, Np)  f32  from prepare_linear_params
    returns (batch, out_features) f32
    """
    M, K = x.shape
    assert K == in_features, "in_features mismatch"
    tn, tk, Np, Kp = _plan_nk(out_features, in_features, tn_max, tk_max)
    assert w_kn.shape == (Kp, Np) and b_1n.shape == (1, Np), (
        "params were not prepared with a matching tile configuration"
    )
    tm, Mp = _plan_m(M, tm_max)

    # v7x megacore: if M fits in one i block, make sure the j ("parallel")
    # axis has >= 2 blocks so both TensorCores get work.
    if Mp // tm == 1 and Np // tn == 1 and Np >= 256:
        for c in range(tn - 128, 0, -128):
            if Np % c == 0:
                tn = c
                break

    x_bf = x.astype(jnp.bfloat16)
    if (Mp, Kp) != (M, K):
        x_bf = jnp.pad(x_bf, ((0, Mp - M), (0, Kp - K)))

    grid = (Mp // tm, Np // tn, Kp // tk)

    # Streamed bytes including re-reads: x is read once per j block, W once
    # per i block, bias once, output written once.
    cost = pl.CostEstimate(
        flops=2 * Mp * Np * Kp,
        transcendentals=0,
        bytes_accessed=(
            Mp * Kp * 2 * grid[1] + Kp * Np * 2 * grid[0] + Np * 4 + Mp * Np * 4
        ),
    )

    # Double-buffered working set: x, W, output tiles (+ bias), with headroom.
    vmem_bytes = 2 * (tm * tk * 2) + 2 * (tk * tn * 2) + 2 * (tm * tn * 4) + 2 * (tn * 4)
    vmem_limit = min(max(vmem_bytes * 3 // 2 + 2 * _MIB, 16 * _MIB), 48 * _MIB)

    y_p = pl.pallas_call(
        _linear_kernel,
        out_shape=jax.ShapeDtypeStruct((Mp, Np), jnp.float32),
        grid_spec=pltpu.PrefetchScalarGridSpec(
            num_scalar_prefetch=0,
            grid=grid,
            in_specs=[
                pl.BlockSpec((tm, tk), lambda i, j, k: (i, k)),
                pl.BlockSpec((tk, tn), lambda i, j, k: (k, j)),
                pl.BlockSpec((1, tn), lambda i, j, k: (0, j)),
            ],
            out_specs=pl.BlockSpec((tm, tn), lambda i, j, k: (i, j)),
        ),
        compiler_params=pltpu.CompilerParams(
            dimension_semantics=("parallel", "parallel", "arbitrary"),
            vmem_limit_bytes=vmem_limit,
        ),
        cost_estimate=cost,
    )(x_bf, w_kn, b_1n)

    if (Mp, Np) != (M, out_features):
        return y_p[:M, :out_features]
    return y_p


if __name__ == "__main__":
    # Small shapes implied by the module: a Linear(in_features, out_features).
    batch, in_features, out_features = 8, 32, 16

    key = jax.random.PRNGKey(0)
    kx, kw, kb = jax.random.split(key, 3)

    x = jax.random.normal(kx, (batch, in_features), dtype=jnp.float32)
    # Deterministic, in-script parameter init (no checkpoint loading).
    weight = 0.05 * jax.random.normal(
        kw, (out_features, in_features), dtype=jnp.float32
    )
    bias = 0.01 * jax.random.normal(kb, (out_features,), dtype=jnp.float32)

    # One-time parameter preprocessing (hoisted out of the forward pass).
    w_kn, b_1n = prepare_linear_params(weight, bias)

    y = neural_cell_forward(
        x, w_kn, b_1n, out_features=out_features, in_features=in_features
    )
    y = jax.block_until_ready(y)
    assert y.shape == (batch, out_features)
    assert y.dtype == jnp.float32

    # Reference 1: same bf16-input / f32-accumulate recipe as the kernel.
    xb = x.astype(jnp.bfloat16).astype(jnp.float32)
    wb = weight.astype(jnp.bfloat16).astype(jnp.float32)
    y_ref_bf16 = jnp.dot(xb, wb.T, precision="highest") + bias
    assert jnp.allclose(y, y_ref_bf16, atol=1e-4, rtol=1e-4)

    # Reference 2: full-f32 nn.Linear semantics (loose tolerance for bf16 inputs).
    y_ref_f32 = jnp.dot(x, weight.T, precision="highest") + bias
    assert jnp.allclose(y, y_ref_f32, atol=3e-2, rtol=3e-2)

    print("KERNEL_OK")
</pallas_src>

<mosaic_0001>
module attributes {stable_mosaic.version = 11 : i64} {
  func.func @_linear_kernel(%arg0: i32, %arg1: i32, %arg2: i32, %arg3: memref<16x128xbf16, #tpu.memory_space<vmem>>, %arg4: memref<128x128xbf16, #tpu.memory_space<vmem>>, %arg5: memref<1x128xf32, #tpu.memory_space<vmem>>, %arg6: memref<16x128xf32, #tpu.memory_space<vmem>>) attributes {dimension_semantics = [#tpu.dimension_semantics<parallel>, #tpu.dimension_semantics<parallel>, #tpu.dimension_semantics<arbitrary>], iteration_bounds = array<i64: 1, 1, 1>, scalar_prefetch = 0 : i64, scratch_operands = 0 : i64, tpu.core_type = #tpu.core_type<tc>, window_params = [{transform_indices = @transform_0, window_bounds = array<i64: 16, 128>}, {transform_indices = @transform_1, window_bounds = array<i64: 128, 128>}, {transform_indices = @transform_2, window_bounds = array<i64: 1, 128>}, {transform_indices = @transform_3, window_bounds = array<i64: 16, 128>}]} {
    %c0_i32 = arith.constant 0 : i32
    %0 = arith.cmpi eq, %arg2, %c0_i32 : i32
    %1 = arith.extui %0 : i1 to i32
    %c0_i32_0 = arith.constant 0 : i32
    %2 = arith.cmpi ne, %1, %c0_i32_0 : i32
    scf.if %2 {
      %c0_8 = arith.constant 0 : index
      %c0_9 = arith.constant 0 : index
      %9 = vector.load %arg5[%c0_8, %c0_9] : memref<1x128xf32, #tpu.memory_space<vmem>>, vector<1x128xf32>
      %10 = vector.shape_cast %9 : vector<1x128xf32> to vector<1x128xf32>
      %11 = vector.broadcast %10 : vector<1x128xf32> to vector<16x128xf32>
      %c0_10 = arith.constant 0 : index
      %c0_11 = arith.constant 0 : index
      %12 = vector.load %arg6[%c0_10, %c0_11] : memref<16x128xf32, #tpu.memory_space<vmem>>, vector<16x128xf32>
      tpu.vector_store %arg6[%c0_10, %c0_11], %11 {strides = array<i32>} : memref<16x128xf32, #tpu.memory_space<vmem>>, vector<16x128xf32>,
    } else {
    }
    %c0 = arith.constant 0 : index
    %c0_1 = arith.constant 0 : index
    %3 = vector.load %arg6[%c0, %c0_1] : memref<16x128xf32, #tpu.memory_space<vmem>>, vector<16x128xf32>
    %c0_2 = arith.constant 0 : index
    %c0_3 = arith.constant 0 : index
    %4 = vector.load %arg3[%c0_2, %c0_3] : memref<16x128xbf16, #tpu.memory_space<vmem>>, vector<16x128xbf16>
    %c0_4 = arith.constant 0 : index
    %c0_5 = arith.constant 0 : index
    %5 = vector.load %arg4[%c0_4, %c0_5] : memref<128x128xbf16, #tpu.memory_space<vmem>>, vector<128x128xbf16>
    %cst = arith.constant dense<0.000000e+00> : vector<16x128xf32>
    %6 = tpu.matmul %4, %5, %cst {dimension_numbers = #tpu.dot_dimension_numbers<[1], [0], [0], [1], [0, 0, 1, 1], [], []>} : vector<16x128xbf16>, vector<128x128xbf16>, vector<16x128xf32> -> vector<16x128xf32>
    %7 = arith.addf %3, %6 : vector<16x128xf32>
    %c0_6 = arith.constant 0 : index
    %c0_7 = arith.constant 0 : index
    %8 = vector.load %arg6[%c0_6, %c0_7] : memref<16x128xf32, #tpu.memory_space<vmem>>, vector<16x128xf32>
    tpu.vector_store %arg6[%c0_6, %c0_7], %7 {strides = array<i32>} : memref<16x128xf32, #tpu.memory_space<vmem>>, vector<16x128xf32>,
    return
  }
  func.func @transform_0(%arg0: i32, %arg1: i32, %arg2: i32) -> (i32, i32) {
    %c0_i32 = arith.constant 0 : i32
    return %arg0, %arg2 : i32, i32
  }
  func.func @transform_1(%arg0: i32, %arg1: i32, %arg2: i32) -> (i32, i32) {
    %c0_i32 = arith.constant 0 : i32
    return %arg2, %arg1 : i32, i32
  }
  func.func @transform_2(%arg0: i32, %arg1: i32, %arg2: i32) -> (i32, i32) {
    %c0_i32 = arith.constant 0 : i32
    %c0_i32_0 = arith.constant 0 : i32
    return %c0_i32, %arg1 : i32, i32
  }
  func.func @transform_3(%arg0: i32, %arg1: i32, %arg2: i32) -> (i32, i32) {
    %c0_i32 = arith.constant 0 : i32
    return %arg0, %arg1 : i32, i32
  }
}

</mosaic_0001>

<bundles_post_ra>
// kernel: neural_cell_forward.1
= control target key start
LH: loop header
LB: loop body
LE: loop exit
PB: predicated region body
PF: predicated region fallthrough
CT: control target
= control target key end

     0   :  { %8 = vsyncpa [#allocation3], 0  ;;  %s243_s12 = smov [#allocation2]   ;;  %s292_s0 = inlined_call_operand.vmem [shape: bf16[16,128], index: 0, kind: input, shape index: {}]   ;;  %s293_s1 = inlined_call_operand.hbm [shape: bf16[128,128], index: 1, kind: input, shape index: {}]   ;;  %s294_s2 = inlined_call_operand.vmem [shape: f32[1,128], index: 2, kind: input, shape index: {}]   ;;  %s295_s3 = inlined_call_operand.vmem [shape: f32[16,128], index: 3, kind: output, shape index: {}]  }
   0x1   :  { %s16_s13 = sshll.u32 %s243_s12, 4  ;;  %s219_s16 = scalar_lea.hbm %s293_s1, 1024  ;;  %s17_s13 = int_to_ptr.vmem [resolvable:$true] %s16_s13 }
   0x2   :  { %p220_p0 = scmp.ne.s32.totalorder %s293_s1, %s219_s16  ;;  %p223_p1 = scmp.lt.u32.totalorder %s219_s16, %s293_s1 }
   0x4   :  { %p225_p2 = pnand %p223_p1, %p220_p0 }
   0x6   :  { %228 = shalt.err (!%p225_p2)
}
   0x7   :  { %s229_s21 = scalar_lea.vmem %s17_s13, 1024  ;;  %p234_p4 = scmp.lt.s32.totalorder %s17_s13, %s17_s13 }
   0x8   :  { %p230_p3 = scmp.ne.s32.totalorder %s17_s13, %s229_s21  ;;  %p235_p5 = scmp.lt.s32.totalorder %s229_s21, %s229_s21 }
   0xa   :  { %p236_p6 = por %p235_p5, %p234_p4 }
   0xc   :  { %p237_p7 = pnand %p236_p6, %p230_p3 }
   0xe   :  { %240 = shalt.err (!%p237_p7)
}
   0xf   :  { %s244_s22 = smov 64   ;;  %s245_s23 = smov 4  }
  0x10   :  { %22 = dma.hbm_to_vmem [thread:$0]  %s293_s1, 1024, %s17_s13, [#allocation3], %s244_s22, %s244_s22, %s245_s23  }
  0x11   :  { %241 = dma.done.wait [#allocation3], 1024  }
  0x12   :  { %242 = vsyncadd [#allocation3], 4294966272  ;;  %v246_v0 = vmov 0.0   ;;  %vm247_vm0 = vmmov 0   ;;  %v210_v1 = vld [vmem:[#allocation2] sm:$0xff]   ;;  %v211_v2 = vld [vmem:[#allocation2 + $0x8] sm:$0xff]  }
  0x13   :  { %185 = vmatprep.subr.bf16.mxu0 %v246_v0  ;;  %201 = vmatprep.mubr.msk.bf16.mxu0 %vm247_vm0, %v246_v0  ;;  %v212_v3 = vld [vmem:[#allocation2 + $0x10] sm:$0xff]   ;;  %v213_v4 = vld [vmem:[#allocation2 + $0x18] sm:$0xff]   ;;  %v214_v5 = vld [vmem:[#allocation2 + $0x20] sm:$0xff]  }
  0x14   :  { %186 = vmatpush3.bf16.msra.mxu0 %v210_v1  ;;  %v215_v6 = vld [vmem:[#allocation2 + $0x28] sm:$0xff]   ;;  %v216_v7 = vld [vmem:[#allocation2 + $0x30] sm:$0xff]   ;;  %v217_v8 = vld [vmem:[#allocation2 + $0x38] sm:$0xff]  }
  0x15   :  { %187 = vmatprep.subr.bf16.mxu0 %v246_v0  ;;  %v218_v9 = vld [vmem:[%s292_s0] sm:$0xff]  }
  0x16   :  { %v166_v10 = vld [vmem:[%s294_s2] ss:$0 sm:$0xff] }
  0x18   :  { %188 = vmatpush3.bf16.msra.mxu0 %v211_v2 }
  0x19   :  { %189 = vmatprep.subr.bf16.mxu0 %v246_v0 }
  0x1c   :  { %190 = vmatpush3.bf16.msra.mxu0 %v212_v3 }
  0x1d   :  { %191 = vmatprep.subr.bf16.mxu0 %v246_v0 }
  0x20   :  { %192 = vmatpush3.bf16.msra.mxu0 %v213_v4 }
  0x21   :  { %193 = vmatprep.subr.bf16.mxu0 %v246_v0 }
  0x24   :  { %194 = vmatpush3.bf16.msra.mxu0 %v214_v5 }
  0x25   :  { %195 = vmatprep.subr.bf16.mxu0 %v246_v0 }
  0x28   :  { %196 = vmatpush3.bf16.msra.mxu0 %v215_v6 }
  0x29   :  { %197 = vmatprep.subr.bf16.mxu0 %v246_v0 }
  0x2c   :  { %198 = vmatpush3.bf16.msra.mxu0 %v216_v7 }
  0x2d   :  { %199 = vmatprep.subr.bf16.mxu0 %v246_v0 }
  0x30   :  { %200 = vmatpush3.bf16.msra.mxu0 %v217_v8 }
  0x33   :  { %202 = vmatmul.mubr.bf16.vlgmr.msra.gmra.mrb[0].mxu0 %v218_v9 }
 0x106   :  { %v150_v11 = vpop.f32.mrb[0].mxu0 }
 0x107   :  { %v157_v12 = vadd.f32 %v166_v10, %v150_v11  ;;  %v203_v13 = vpop.f32.mrb[1].mxu0 }
 0x108   :  { %v153_v14 = vpop.f32.mrb[2].mxu0 }
 0x109   :  { %159 = vst [vmem:[%s295_s3] sm:$0xff] %v157_v12  ;;  %v158_v15 = vadd.f32 %v166_v10, %v153_v14  ;;  %v204_v16 = vpop.f32.mrb[3].mxu0 }
 0x10b   :  { %160 = vst [vmem:[%s295_s3 + $0x8] sm:$0xff] %v158_v15 }
 0x10c   :  { %165 = vsyncpa [#allocation3], 1 }

</bundles_post_ra>
